<compile_context>
chip_gen: v6e
topology: v6e:2x2x1
jax: 0.10.0
libtpu: 0.0.40
codegen_flags: <defaults>
</compile_context>

<pallas_src>
import functools
import math

import jax
import jax.numpy as jnp
from jax.experimental import pallas as pl
from jax.experimental.pallas import tpu as pltpu

FREQ_DIM = 256          # frequency_embedding_size
HIDDEN = 128            # hidden_size
MAX_PERIOD = 10000.0
HALF = FREQ_DIM // 2


def _round_up(x, m):
    return (x + m - 1) // m * m


def timestep_embedder_kernel(t_ref, freqs_ref, w1_ref, b1_ref, w2_ref, b2_ref,
                             out_ref, *, split_k):
    """One row tile: sinusoidal embed -> Linear -> SiLU -> Linear."""
    # Sinusoidal embedding: elementwise math stays f32 (VALU sin/cos polys).
    t = t_ref[...]                                  # (TN, 1) f32
    args = t * freqs_ref[...]                       # (TN, HALF) f32
    cos = jnp.cos(args)
    sin = jnp.sin(args)

    # First Linear.  W1 arrives as a single (FREQ_DIM, HIDDEN) bf16 block;
    # static ref slices are free views, so both forms share the same input.
    if split_k:
        # v5e: two native 128-deep MXU pushes (4x128x128 MXU).
        h = (jnp.dot(cos.astype(jnp.bfloat16), w1_ref[:HALF, :],
                     preferred_element_type=jnp.float32)
             + jnp.dot(sin.astype(jnp.bfloat16), w1_ref[HALF:, :],
                       preferred_element_type=jnp.float32))
    else:
        # v6e / v7x: one K=256 matmul fills the 256-deep MXU.  Lane concat at
        # a 128-lane tile boundary needs no cross-lane shuffle.
        emb = jnp.concatenate(
            [cos.astype(jnp.bfloat16), sin.astype(jnp.bfloat16)], axis=-1)
        h = jnp.dot(emb, w1_ref[...], preferred_element_type=jnp.float32)
    h = h + b1_ref[...]

    # SiLU: exp and approx reciprocal go to the (otherwise idle) EUP slot.
    h = h * pl.reciprocal(1.0 + jnp.exp(-h), approx=True)

    # Second Linear (HIDDEN -> HIDDEN), bf16 operands, f32 accumulation.
    out = jnp.dot(h.astype(jnp.bfloat16), w2_ref[...],
                  preferred_element_type=jnp.float32) + b2_ref[...]
    out_ref[...] = out.astype(out_ref.dtype)


def prepare_timestep_embedder_params(w1, b1, w2, b2):
    """One-time (init-time) parameter prep — keep the per-call path free of
    convert / slice / reshape HBM traffic.

    w1: (FREQ_DIM, HIDDEN), b1: (HIDDEN,), w2: (HIDDEN, HIDDEN), b2: (HIDDEN,)
    stored (in, out), i.e. transposed from torch.nn.Linear.
    """
    freqs = jnp.exp(
        (-math.log(MAX_PERIOD) / HALF) * jnp.arange(HALF, dtype=jnp.float32)
    ).reshape(1, HALF)
    return dict(
        freqs=freqs,                                    # (1, HALF) f32
        w1=w1.astype(jnp.bfloat16),                     # (FREQ_DIM, HIDDEN)
        b1=b1.reshape(1, HIDDEN).astype(jnp.float32),   # added to f32 acc
        w2=w2.astype(jnp.bfloat16),                     # (HIDDEN, HIDDEN)
        b2=b2.reshape(1, HIDDEN).astype(jnp.float32),
    )


def timestep_embedder(t, params, *, row_block=512, split_k=False,
                      out_dtype=jnp.float32):
    """t: (N,) timesteps -> (N, HIDDEN) embeddings.

    row_block: sweep {256, 512, 1024} for large-N workloads (amortizes the
      ~0.35 us/step grid overhead; VMEM stays tiny even on v7x's 64 MiB).
    split_k:   True keeps the 128-deep MXU shape (v5e); False (default) uses
      one K=256 matmul (v6e / v7x).
    out_dtype: pass jnp.bfloat16 if the downstream consumer is bf16 to halve
      output writeback traffic.
    """
    n = t.shape[0]
    tn = min(row_block, _round_up(n, 8))
    n_pad = _round_up(n, tn)

    # Cheap pad (single XLA pad op; no dynamic-update scatter).
    t2 = jnp.pad(t.astype(jnp.float32), (0, n_pad - n)).reshape(n_pad, 1)

    freqs, w1, b1, w2, b2 = (params["freqs"], params["w1"], params["b1"],
                             params["w2"], params["b2"])

    cost = pl.CostEstimate(
        flops=2 * n_pad * (FREQ_DIM * HIDDEN + HIDDEN * HIDDEN),
        transcendentals=n_pad * (FREQ_DIM + 2 * HIDDEN),
        bytes_accessed=(w1.size + w2.size) * 2
        + (b1.size + b2.size + freqs.size) * 4
        + n_pad * 4
        + n_pad * HIDDEN * jnp.dtype(out_dtype).itemsize,
    )

    # Resident operands never change across the row grid -> single-buffer
    # (default 2-deep buffering would just double their VMEM footprint).
    resident = dict(pipeline_mode=pl.Buffered(1))

    out = pl.pallas_call(
        functools.partial(timestep_embedder_kernel, split_k=split_k),
        out_shape=jax.ShapeDtypeStruct((n_pad, HIDDEN), out_dtype),
        grid=(n_pad // tn,),
        in_specs=[
            pl.BlockSpec((tn, 1), lambda i: (i, 0)),                        # t (streamed)
            pl.BlockSpec((1, HALF), lambda i: (0, 0), **resident),          # freqs
            pl.BlockSpec((FREQ_DIM, HIDDEN), lambda i: (0, 0), **resident),  # w1
            pl.BlockSpec((1, HIDDEN), lambda i: (0, 0), **resident),        # b1
            pl.BlockSpec((HIDDEN, HIDDEN), lambda i: (0, 0), **resident),   # w2
            pl.BlockSpec((1, HIDDEN), lambda i: (0, 0), **resident),        # b2
        ],
        out_specs=pl.BlockSpec((tn, HIDDEN), lambda i: (i, 0)),
        # v7x: if profiling shows the row grid not sharding across both
        # TensorCores, switch to pltpu.CORE_PARALLEL (and keep n_pad//tn even).
        compiler_params=pltpu.CompilerParams(
            dimension_semantics=("parallel",)),
        cost_estimate=cost,
    )(t2, freqs, w1, b1, w2, b2)

    return out[:n]


def _reference(t, w1, b1, w2, b2):
    """Pure-JAX f32 reference mirroring the PyTorch forward."""
    freqs = jnp.exp(
        -math.log(MAX_PERIOD) * jnp.arange(HALF, dtype=jnp.float32) / HALF)
    args = t[:, None].astype(jnp.float32) * freqs[None]
    emb = jnp.concatenate([jnp.cos(args), jnp.sin(args)], axis=-1)
    h = emb @ w1 + b1
    h = h * jax.nn.sigmoid(h)
    return h @ w2 + b2


if __name__ == "__main__":
    key = jax.random.PRNGKey(0)
    k_t, k_w1, k_b1, k_w2, k_b2 = jax.random.split(key, 5)

    N = 8  # batch of timesteps
    t = jax.random.uniform(k_t, (N,), jnp.float32, minval=0.0, maxval=1000.0)

    # Deterministic synthetic parameters (nn.Linear shapes, stored (in, out)).
    w1 = jax.random.normal(k_w1, (FREQ_DIM, HIDDEN), jnp.float32) * 0.02
    b1 = jax.random.normal(k_b1, (HIDDEN,), jnp.float32) * 0.01
    w2 = jax.random.normal(k_w2, (HIDDEN, HIDDEN), jnp.float32) * 0.02
    b2 = jax.random.normal(k_b2, (HIDDEN,), jnp.float32) * 0.01

    params = prepare_timestep_embedder_params(w1, b1, w2, b2)  # once, at init
    ref = _reference(t, w1, b1, w2, b2)

    # Default merged K=256 path (v6e / v7x).
    out = jax.block_until_ready(timestep_embedder(t, params, split_k=False))
    assert out.shape == (N, HIDDEN)
    # bf16 matmul operands + EUP approx reciprocal -> loosened tolerance.
    assert jnp.allclose(out, ref, atol=2e-2, rtol=2e-2), "merged-K mismatch"

    # Split-K path (v5e-native 128-deep MXU shape) uses the same params.
    out_s = jax.block_until_ready(timestep_embedder(t, params, split_k=True))
    assert jnp.allclose(out_s, ref, atol=2e-2, rtol=2e-2), "split-K mismatch"

    print("KERNEL_OK")
</pallas_src>

<mosaic_0001>
module attributes {stable_mosaic.version = 11 : i64} {
  func.func @timestep_embedder_kernel(%arg0: i32, %arg1: memref<8x1xf32, #tpu.memory_space<vmem>>, %arg2: memref<1x128xf32, #tpu.memory_space<vmem>>, %arg3: memref<256x128xbf16, #tpu.memory_space<vmem>>, %arg4: memref<1x128xf32, #tpu.memory_space<vmem>>, %arg5: memref<128x128xbf16, #tpu.memory_space<vmem>>, %arg6: memref<1x128xf32, #tpu.memory_space<vmem>>, %arg7: memref<8x128xf32, #tpu.memory_space<vmem>>) attributes {dimension_semantics = [#tpu.dimension_semantics<parallel>], iteration_bounds = array<i64: 1>, scalar_prefetch = 0 : i64, scratch_operands = 0 : i64, tpu.core_type = #tpu.core_type<tc>, window_params = [{transform_indices = @transform_0, window_bounds = array<i64: 8, 1>}, {pipeline_mode = #tpu.pipeline_mode<synchronous>, transform_indices = @transform_1, window_bounds = array<i64: 1, 128>}, {pipeline_mode = #tpu.pipeline_mode<synchronous>, transform_indices = @transform_2, window_bounds = array<i64: 256, 128>}, {pipeline_mode = #tpu.pipeline_mode<synchronous>, transform_indices = @transform_3, window_bounds = array<i64: 1, 128>}, {pipeline_mode = #tpu.pipeline_mode<synchronous>, transform_indices = @transform_4, window_bounds = array<i64: 128, 128>}, {pipeline_mode = #tpu.pipeline_mode<synchronous>, transform_indices = @transform_5, window_bounds = array<i64: 1, 128>}, {transform_indices = @transform_6, window_bounds = array<i64: 8, 128>}]} {
    %c0 = arith.constant 0 : index
    %c0_0 = arith.constant 0 : index
    %0 = vector.load %arg1[%c0, %c0_0] : memref<8x1xf32, #tpu.memory_space<vmem>>, vector<8x1xf32>
    %c0_1 = arith.constant 0 : index
    %c0_2 = arith.constant 0 : index
    %1 = vector.load %arg2[%c0_1, %c0_2] : memref<1x128xf32, #tpu.memory_space<vmem>>, vector<1x128xf32>
    %2 = vector.broadcast %0 : vector<8x1xf32> to vector<8x128xf32>
    %3 = vector.broadcast %1 : vector<1x128xf32> to vector<8x128xf32>
    %4 = arith.mulf %2, %3 : vector<8x128xf32>
    %5 = math.cos %4 : vector<8x128xf32>
    %6 = math.sin %4 : vector<8x128xf32>
    %7 = arith.truncf %5 : vector<8x128xf32> to vector<8x128xbf16>
    %8 = arith.truncf %6 : vector<8x128xf32> to vector<8x128xbf16>
    %9 = tpu.concatenate %7, %8 in 1 : vector<8x128xbf16>, vector<8x128xbf16> -> vector<8x256xbf16>
    %c0_3 = arith.constant 0 : index
    %c0_4 = arith.constant 0 : index
    %10 = vector.load %arg3[%c0_3, %c0_4] : memref<256x128xbf16, #tpu.memory_space<vmem>>, vector<256x128xbf16>
    %cst = arith.constant dense<0.000000e+00> : vector<8x128xf32>
    %11 = tpu.matmul %9, %10, %cst {dimension_numbers = #tpu.dot_dimension_numbers<[1], [0], [0], [1], [0, 0, 1, 1], [], []>} : vector<8x256xbf16>, vector<256x128xbf16>, vector<8x128xf32> -> vector<8x128xf32>
    %c0_5 = arith.constant 0 : index
    %c0_6 = arith.constant 0 : index
    %12 = vector.load %arg4[%c0_5, %c0_6] : memref<1x128xf32, #tpu.memory_space<vmem>>, vector<1x128xf32>
    %13 = vector.broadcast %12 : vector<1x128xf32> to vector<8x128xf32>
    %14 = arith.addf %11, %13 : vector<8x128xf32>
    %cst_7 = arith.constant 0.000000e+00 : f32
    %15 = vector.broadcast %cst_7 : f32 to vector<8x128xf32>
    %16 = arith.subf %15, %14 : vector<8x128xf32>
    %17 = math.exp %16 : vector<8x128xf32>
    %cst_8 = arith.constant 1.000000e+00 : f32
    %18 = vector.broadcast %cst_8 : f32 to vector<8x128xf32>
    %19 = arith.addf %18, %17 : vector<8x128xf32>
    %20 = tpu.reciprocal %19 {approx = true} : vector<8x128xf32> -> vector<8x128xf32>
    %21 = arith.mulf %14, %20 : vector<8x128xf32>
    %22 = arith.truncf %21 : vector<8x128xf32> to vector<8x128xbf16>
    %c0_9 = arith.constant 0 : index
    %c0_10 = arith.constant 0 : index
    %23 = vector.load %arg5[%c0_9, %c0_10] : memref<128x128xbf16, #tpu.memory_space<vmem>>, vector<128x128xbf16>
    %cst_11 = arith.constant dense<0.000000e+00> : vector<8x128xf32>
    %24 = tpu.matmul %22, %23, %cst_11 {dimension_numbers = #tpu.dot_dimension_numbers<[1], [0], [0], [1], [0, 0, 1, 1], [], []>} : vector<8x128xbf16>, vector<128x128xbf16>, vector<8x128xf32> -> vector<8x128xf32>
    %c0_12 = arith.constant 0 : index
    %c0_13 = arith.constant 0 : index
    %25 = vector.load %arg6[%c0_12, %c0_13] : memref<1x128xf32, #tpu.memory_space<vmem>>, vector<1x128xf32>
    %26 = vector.broadcast %25 : vector<1x128xf32> to vector<8x128xf32>
    %27 = arith.addf %24, %26 : vector<8x128xf32>
    %c0_14 = arith.constant 0 : index
    %c0_15 = arith.constant 0 : index
    %28 = vector.load %arg7[%c0_14, %c0_15] : memref<8x128xf32, #tpu.memory_space<vmem>>, vector<8x128xf32>
    tpu.vector_store %arg7[%c0_14, %c0_15], %27 {strides = array<i32>} : memref<8x128xf32, #tpu.memory_space<vmem>>, vector<8x128xf32>,
    return
  }
  func.func @transform_0(%arg0: i32) -> (i32, i32) {
    %c0_i32 = arith.constant 0 : i32
    %c0_i32_0 = arith.constant 0 : i32
    return %arg0, %c0_i32 : i32, i32
  }
  func.func @transform_1(%arg0: i32) -> (i32, i32) {
    %c0_i32 = arith.constant 0 : i32
    %c0_i32_0 = arith.constant 0 : i32
    %c0_i32_1 = arith.constant 0 : i32
    return %c0_i32, %c0_i32_0 : i32, i32
  }
  func.func @transform_2(%arg0: i32) -> (i32, i32) {
    %c0_i32 = arith.constant 0 : i32
    %c0_i32_0 = arith.constant 0 : i32
    %c0_i32_1 = arith.constant 0 : i32
    return %c0_i32, %c0_i32_0 : i32, i32
  }
  func.func @transform_3(%arg0: i32) -> (i32, i32) {
    %c0_i32 = arith.constant 0 : i32
    %c0_i32_0 = arith.constant 0 : i32
    %c0_i32_1 = arith.constant 0 : i32
    return %c0_i32, %c0_i32_0 : i32, i32
  }
  func.func @transform_4(%arg0: i32) -> (i32, i32) {
    %c0_i32 = arith.constant 0 : i32
    %c0_i32_0 = arith.constant 0 : i32
    %c0_i32_1 = arith.constant 0 : i32
    return %c0_i32, %c0_i32_0 : i32, i32
  }
  func.func @transform_5(%arg0: i32) -> (i32, i32) {
    %c0_i32 = arith.constant 0 : i32
    %c0_i32_0 = arith.constant 0 : i32
    %c0_i32_1 = arith.constant 0 : i32
    return %c0_i32, %c0_i32_0 : i32, i32
  }
  func.func @transform_6(%arg0: i32) -> (i32, i32) {
    %c0_i32 = arith.constant 0 : i32
    %c0_i32_0 = arith.constant 0 : i32
    return %arg0, %c0_i32 : i32, i32
  }
}

</mosaic_0001>

<bundles_post_ra>
// kernel: tpu_custom_call.1
= control target key start
LH: loop header
LB: loop body
LE: loop exit
PB: predicated region body
PF: predicated region fallthrough
CT: control target
= control target key end

     0   :  { %11 = vsyncpa [#allocation3], 0  ;;  %s880_s0 = inlined_call_operand.vmem [shape: f32[8,1], index: 0, kind: input, shape index: {}]   ;;  %s881_s1 = inlined_call_operand.vmem [shape: f32[1,128], index: 1, kind: input, shape index: {}]   ;;  %s882_s2 = inlined_call_operand.hbm [shape: bf16[256,128], index: 2, kind: input, shape index: {}]   ;;  %s883_s3 = inlined_call_operand.vmem [shape: f32[1,128], index: 3, kind: input, shape index: {}]   ;;  %s884_s4 = inlined_call_operand.hbm [shape: bf16[128,128], index: 4, kind: input, shape index: {}]   ;;  %s885_s5 = inlined_call_operand.vmem [shape: f32[1,128], index: 5, kind: input, shape index: {}]   ;;  %s886_s6 = inlined_call_operand.hbm [shape: f32[8,128], index: 6, kind: output, shape index: {}]  }
   0x1   :  { %12 = vsyncpa [#allocation6], 0 }
   0x2   :  { %13 = vsyncpa [#allocation4], 0  ;;  %s789_s21 = smov [#allocation2]  }
   0x3   :  { %s23_s22 = sshll.u32 %s789_s21, 4  ;;  %s24_s22 = int_to_ptr.vmem [resolvable:$true] %s23_s22 }
   0x4   :  { %s731_s23 = scalar_lea.vmem %s24_s22, 2048  ;;  %p736_p1 = scmp.lt.s32.totalorder %s24_s22, %s24_s22 }
   0x5   :  { %p732_p0 = scmp.ne.s32.totalorder %s24_s22, %s731_s23  ;;  %p737_p2 = scmp.lt.s32.totalorder %s731_s23, %s731_s23 }
   0x7   :  { %p738_p3 = por %p737_p2, %p736_p1 }
   0x9   :  { %p739_p4 = pnand %p738_p3, %p732_p0 }
   0xb   :  { %742 = shalt.err (!%p739_p4)
}
   0xc   :  { %s790_s24 = smov 64   ;;  %s791_s25 = smov 4  }
   0xd   :  { %29 = dma.hbm_to_vmem [thread:$0]  %s882_s2, 2048, %s24_s22, [#allocation3], %s790_s24, %s790_s24, %s791_s25  }
   0xe   :  { %s792_s28 = smov [#allocation5]  }
   0xf   :  { %s37_s29 = sshll.u32 %s792_s28, 4  ;;  %s38_s29 = int_to_ptr.vmem [resolvable:$true] %s37_s29 }
  0x10   :  { %s751_s30 = scalar_lea.vmem %s38_s29, 1024  ;;  %p756_p6 = scmp.lt.s32.totalorder %s38_s29, %s38_s29 }
  0x11   :  { %p752_p5 = scmp.ne.s32.totalorder %s38_s29, %s751_s30  ;;  %p757_p7 = scmp.lt.s32.totalorder %s751_s30, %s751_s30 }
  0x13   :  { %p758_p8 = por %p757_p7, %p756_p6 }
  0x15   :  { %p759_p9 = pnand %p758_p8, %p752_p5 }
  0x17   :  { %762 = shalt.err (!%p759_p9)
}
  0x18   :  { %43 = dma.hbm_to_vmem [thread:$0]  %s884_s4, 1024, %s38_s29, [#allocation6], %s790_s24, %s790_s24, %s791_s25  }
  0x19   :  { %783 = dma.done.wait [#allocation3], 2048  }
  0x1a   :  { %784 = vsyncadd [#allocation3], 4294965248 }
  0x1b   :  { %785 = dma.done.wait [#allocation6], 1024  }
  0x1c   :  { %786 = vsyncadd [#allocation6], 4294966272  ;;  %v793_v0 = vmov 0   ;;  %v53_v1 = vld [vmem:[%s880_s0] sm:$0xff]  ;;  %v691_v2 = vld [vmem:[#allocation2 + $0x78] sm:$0xff]  }
  0x1d   :  { %690 = vset.pattern.permute.xlu0 %v793_v0  ;;  %v692_v3 = vld [vmem:[#allocation2 + $0x38] sm:$0xff]   ;;  %v693_v4 = vld [vmem:[#allocation2 + $0x70] sm:$0xff]   ;;  %621 = vmatprep.subr.bf16.mxu0 %v691_v2  ;;  %v695_v6 = vld [vmem:[#allocation2 + $0x68] sm:$0xff]   ;;  %v794_v32 = vmov 2102212464  }
  0x1e   :  { %57 = vperm.xlu0 %690, %v53_v1   ;;  %622 = vmatpush3.bf16.msra.mxu0 %v692_v3  ;;  %v694_v5 = vld [vmem:[#allocation2 + $0x30] sm:$0xff]   ;;  %v696_v7 = vld [vmem:[#allocation2 + $0x28] sm:$0xff]   ;;  %v697_v8 = vld [vmem:[#allocation2 + $0x60] sm:$0xff]   ;;  %v795_v34 = vmov 920167782  }
  0x1f   :  { %623 = vmatprep.subr.bf16.mxu0 %v693_v4  ;;  %v698_v9 = vld [vmem:[#allocation2 + $0x20] sm:$0xff]   ;;  %v699_v10 = vld [vmem:[#allocation2 + $0x58] sm:$0xff]   ;;  %v701_v12 = vld [vmem:[#allocation2 + $0x50] sm:$0xff]   ;;  %v796_v38 = vmov 1326507024  }
  0x20   :  { %v700_v11 = vld [vmem:[#allocation2 + $0x18] sm:$0xff]   ;;  %v702_v13 = vld [vmem:[#allocation2 + $0x10] sm:$0xff]   ;;  %v703_v14 = vld [vmem:[#allocation2 + $0x48] sm:$0xff]   ;;  %v797_v40 = vmov 683565275  }
  0x21   :  { %v704_v15 = vld [vmem:[#allocation2 + $0x8] sm:$0xff]   ;;  %v705_v16 = vld [vmem:[#allocation2 + $0x40] sm:$0xff]   ;;  %v798_v42 = vmov 2475754826   ;;  %v799_v45 = vmov 2131351028  }
  0x22   :  { %624 = vmatpush3.bf16.msra.mxu0 %v694_v5  ;;  %v706_v17 = vld [vmem:[#allocation2] sm:$0xff]  }
  0x23   :  { %625 = vmatprep.subr.bf16.mxu0 %v695_v6  ;;  %v586_v18 = vld [vmem:[%s881_s1] ss:$0 sm:$0xff] }
  0x26   :  { %626 = vmatpush3.bf16.msra.mxu0 %v696_v7 }
  0x27   :  { %627 = vmatprep.subr.bf16.mxu0 %v697_v8 }
  0x2a   :  { %628 = vmatpush3.bf16.msra.mxu0 %v698_v9 }
  0x2b   :  { %629 = vmatprep.subr.bf16.mxu0 %v699_v10 }
  0x2e   :  { %630 = vmatpush3.bf16.msra.mxu0 %v700_v11 }
  0x2f   :  { %631 = vmatprep.subr.bf16.mxu0 %v701_v12 }
  0x32   :  { %632 = vmatpush3.bf16.msra.mxu0 %v702_v13 }
  0x33   :  { %633 = vmatprep.subr.bf16.mxu0 %v703_v14 }
  0x36   :  { %634 = vmatpush3.bf16.msra.mxu0 %v704_v15 }
  0x37   :  { %635 = vmatprep.subr.bf16.mxu0 %v705_v16 }
  0x3a   :  { %636 = vmatpush3.bf16.msra.mxu0 %v706_v17 }
  0x99   :  { %v58_v19 = vpop.permute.xlu0 %57 }
  0x9a   :  { %v850_v20 = vmul.f32 %v586_v18, %v58_v19 }
  0x9c   :  { %v70_v21 = vand.u32 2139095040, %v850_v20  ;;  %v67_v22 = vand.u32 2147483647, %v850_v20  ;;  %vm69_vm7 = vcmp.lt.s32.totalorder %v850_v20, 0  ;;  %vm159_vm15 = vweird.f32 %v850_v20 }
  0x9e   :  { %v71_v23 = vshrl.u32 %v70_v21, 23  ;;  %v74_v25 = vand.u32 8388607, %v67_v22  ;;  %vm68_vm8 = vcmp.le.f32.partialorder %v67_v22, 0.7853982 }
  0xa0   :  { %v587_v24 = vadd.s32 4294967169, %v71_v23  ;;  %v75_v28 = vor.u32 8388608, %v74_v25 }
  0xa2   :  { %v77_v26 = vadd.s32 1, %v587_v24  ;;  %v115_v36 = vshll.u32 %v75_v28, 8 }
  0xa4   :  { %vm78_vm0 = vcmp.gt.s32.totalorder %v77_v26, 0 }
  0xa5   :  { %v79_v27 = vsel %vm78_vm0, %v77_v26, 0  ;;  %vm801_vm0 = vmmov 0  }
  0xa6   :  { %v81_v29 = vand.u32 31, %v79_v27  ;;  %v80_v30 = vshrl.u32 %v79_v27, 5 }
  0xa8   :  { %v82_v31 = vsub.s32 32, %v81_v29  ;;  %v93_v33 = vshll.u32 %v794_v32, %v81_v29  ;;  %v96_v35 = vshll.u32 %v795_v34, %v81_v29  ;;  %v84_v41 = vshll.u32 %v797_v40, %v81_v29 }
  0xa9   :  { %v87_v44 = vshll.u32 %v798_v42, %v81_v29  ;;  %v90_v47 = vshll.u32 %v799_v45, %v81_v29  ;;  %vm102_vm1 = vcmp.lt.s32.totalorder %v80_v30, 4  ;;  %vm99_vm2 = vcmp.lt.s32.totalorder %v80_v30, 1 }
  0xaa   :  { %v94_v37 = vshrl.u32 %v795_v34, %v82_v31  ;;  %v97_v39 = vshrl.u32 %v796_v38, %v82_v31  ;;  %v85_v43 = vshrl.u32 %v798_v42, %v82_v31  ;;  %v88_v46 = vshrl.u32 %v799_v45, %v82_v31 }
  0xab   :  { %v91_v48 = vshrl.u32 %v794_v32, %v82_v31  ;;  %v83_v52 = vshrl.u32 %v797_v40, %v82_v31  ;;  %vm100_vm3 = vcmp.lt.s32.totalorder %v80_v30, 2  ;;  %vm101_vm4 = vcmp.lt.s32.totalorder %v80_v30, 3 }
  0xac   :  { %v95_v49 = vor.u32 %v94_v37, %v93_v33  ;;  %v98_v50 = vor.u32 %v97_v39, %v96_v35  ;;  %v86_v51 = vor.u32 %v85_v43, %v84_v41  ;;  %v89_v53 = vor.u32 %v88_v46, %v87_v44 }
  0xad   :  { %v92_v54 = vor.u32 %v91_v48, %v90_v47 }
  0xae   :  { %v108_v55 = vsel %vm102_vm1, %v95_v49, 920167782  ;;  %v112_v56 = vsel %vm102_vm1, %v98_v50, 1326507024  ;;  %v107_v58 = vsel %vm99_vm2, %v86_v51, %v89_v53  ;;  %v103_v61 = vsel %vm99_vm2, %v83_v52, %v86_v51 }
  0xaf   :  { %v104_v57 = vsel %vm102_vm1, %v92_v54, 2102212464  ;;  %v109_v59 = vsel %vm101_vm4, %v92_v54, %v108_v55  ;;  %v111_v60 = vsel %vm99_vm2, %v89_v53, %v92_v54  ;;  %v113_v0 = vsel %vm101_vm4, %v95_v49, %v112_v56  ;;  %v707_v56 = vld [vmem:[#allocation5 + $0x38] sm:$0xff]  }
  0xb0   :  { %v105_v62 = vsel %vm101_vm4, %v89_v53, %v104_v57  ;;  %v110_v63 = vsel %vm100_vm3, %v107_v58, %v109_v59  ;;  %v114_v1 = vsel %vm100_vm3, %v111_v60, %v113_v0  ;;  %v800_v57 = vmov 0.0   ;;  %v708_v58 = vld [vmem:[#allocation5 + $0x30] sm:$0xff]   ;;  %v709_v59 = vld [vmem:[#allocation5 + $0x28] sm:$0xff]   ;;  %v711_v60 = vld [vmem:[#allocation5 + $0x18] sm:$0xff]  }
  0xb1   :  { %v856_v2 = vmul.u32.u64.low %v115_v36, %v110_v63  ;;  %v857_v3 = vmul.u32.u64.high %v115_v36, %v110_v63, %v856_v2  ;;  %v859_v4 = vmul.u32.u64.low %v115_v36, %v114_v1  ;;  %v860_v5 = vmul.u32.u64.high %v115_v36, %v114_v1, %v859_v4  ;;  %652 = vmatprep.subr.bf16.mxu1 %v800_v57  ;;  %668 = vmatprep.mubr.msk.bf16.mxu1 %vm801_vm0, %v800_v57  ;;  %v714_v63 = vld [vmem:[#allocation5] sm:$0xff]  }
  0xb2   :  { %v106_v6 = vsel %vm100_vm3, %v103_v61, %v105_v62  ;;  %653 = vmatpush3.bf16.msra.mxu1 %v707_v56  ;;  %v712_v61 = vld [vmem:[#allocation5 + $0x10] sm:$0xff]   ;;  %v713_v62 = vld [vmem:[#allocation5 + $0x8] sm:$0xff]   ;;  %v595_v1 = vld [vmem:[%s883_s3] ss:$0 sm:$0xff]  ;;  %s802_s3 = smov [#allocation7]  }
  0xb3   :  { %v125_v7 = vadd.s32 1, %v857_v3  ;;  %v122_v8 = vmul.u32 %v115_v36, %v106_v6  ;;  %vm124_vm5 = vc.u32 %v860_v5, %v856_v2  ;;  %v123_v21 = vadd.s32 %v856_v2, %v860_v5  ;;  %654 = vmatprep.subr.bf16.mxu1 %v800_v57  ;;  %s576_s13 = sshll.u32 %s802_s3, 4  ;;  %s577_s13 = int_to_ptr.vmem [resolvable:$true] %s576_s13 }
  0xb4   :  { %s763_s14 = scalar_lea.vmem %s577_s13, 128  ;;  %p768_p11 = scmp.lt.s32.totalorder %s577_s13, %s577_s13 }
  0xb5   :  { %v126_v9 = vsel %vm124_vm5, %v125_v7, %v857_v3  ;;  %p764_p10 = scmp.ne.s32.totalorder %s577_s13, %s763_s14  ;;  %p769_p12 = scmp.lt.s32.totalorder %s763_s14, %s763_s14 }
  0xb6   :  { %v127_v10 = vadd.s32 %v126_v9, %v122_v8  ;;  %655 = vmatpush3.bf16.msra.mxu1 %v708_v58 }
  0xb7   :  { %656 = vmatprep.subr.bf16.mxu1 %v800_v57  ;;  %p770_p13 = por %p769_p12, %p768_p11 }
  0xb8   :  { %v128_v11 = vadd.s32 536870912, %v127_v10 }
  0xb9   :  { %p771_p0 = pnand %p770_p13, %p764_p10 }
  0xba   :  { %v129_v12 = vshrl.u32 %v128_v11, 30  ;;  %657 = vmatpush3.bf16.msra.mxu1 %v709_v59 }
  0xbb   :  { %658 = vmatprep.subr.bf16.mxu1 %v800_v57 }
  0xbc   :  { %v130_v13 = vshll.u32 %v129_v12, 30  ;;  %v153_v35 = vsub.s32 4, %v129_v12 }
  0xbe   :  { %v131_v14 = vsub.s32 %v127_v10, %v130_v13  ;;  %v154_v38 = vsel %vm69_vm7, %v153_v35, %v129_v12 }
  0xbf   :  { %v156_v39 = vsel %vm68_vm8, 0, %v154_v38 }
  0xc0   :  { %v133_v15 = vsub.s32 0, %v131_v14  ;;  %v263_v40 = vadd.s32 3, %v156_v39  ;;  %v160_v41 = vand.u32 3, %v156_v39 }
  0xc2   :  { %v588_v16 = vmin.u32 %v133_v15, %v131_v14  ;;  %v264_v42 = vand.u32 3, %v263_v40  ;;  %vm165_vm9 = vcmp.eq.s32.totalorder %v160_v41, 2  ;;  %vm162_vm11 = vcmp.eq.s32.totalorder %v160_v41, 0 }
  0xc3   :  { %vm161_vm13 = vcmp.lt.s32.totalorder %v160_v41, 2 }
  0xc4   :  { %v135_v17 = vclz %v588_v16  ;;  %vm269_vm10 = vcmp.eq.s32.totalorder %v264_v42, 2  ;;  %vm266_vm12 = vcmp.eq.s32.totalorder %v264_v42, 0  ;;  %vm265_vm14 = vcmp.lt.s32.totalorder %v264_v42, 2 }
  0xc6   :  { %v589_v18 = vadd.s32 4294967294, %v135_v17 }
  0xc8   :  { %vm590_vm6 = vcmp.lt.s32.totalorder %v589_v18, 0 }
  0xc9   :  { %v138_v19 = vsel %vm590_vm6, 0, %v589_v18 }
  0xca   :  { %v139_v23 = vsub.s32 32, %v138_v19  ;;  %v143_v24 = vsub.s32 4294967266, %v138_v19  ;;  %v140_v25 = vshll.u32 %v131_v14, %v138_v19  ;;  %v612_v14 = vld [vmem:[%s885_s5] ss:$0 sm:$0xff] }
  0xcc   :  { %v141_v26 = vshrl.u32 %v123_v21, %v139_v23  ;;  %v144_v27 = vadd.s32 127, %v143_v24 }
  0xce   :  { %v142_v28 = vor.u32 %v141_v26, %v140_v25  ;;  %v145_v29 = vshll.u32 %v144_v27, 23 }
  0xd0   :  { %v146_v30 = vor.u32 4788187, %v145_v29  ;;  %v149_v32 = vcvt.s32.f32 %v142_v28 }
  0xd2   :  { %v147_v31 = vand.u32 2147483647, %v146_v30 }
  0xd4   :  { %v150_v33 = vmul.f32 %v149_v32, %v147_v31 }
  0xd6   :  { %v151_v34 = vxor.u32 2147483648, %v150_v33 }
  0xd8   :  { %v152_v36 = vsel %vm69_vm7, %v151_v34, %v150_v33 }
  0xd9   :  { %v155_v37 = vsel %vm68_vm8, %v850_v20, %v152_v36  ;;  %v710_v20 = vld [vmem:[#allocation5 + $0x20] sm:$0xff]  }
  0xda   :  { %715 = vcosq.f32 %v155_v37  ;;  %659 = vmatpush3.bf16.msra.mxu1 %v710_v20 }
  0xdb   :  { %717 = vsinq.f32 %v155_v37  ;;  %660 = vmatprep.subr.bf16.mxu1 %v800_v57 }
  0xde   :  { %661 = vmatpush3.bf16.msra.mxu1 %v711_v60 }
  0xdf   :  { %662 = vmatprep.subr.bf16.mxu1 %v800_v57 }
  0xe2   :  { %663 = vmatpush3.bf16.msra.mxu1 %v712_v61 }
  0xe3   :  { %664 = vmatprep.subr.bf16.mxu1 %v800_v57 }
  0xe6   :  { %665 = vmatpush3.bf16.msra.mxu1 %v713_v62 }
  0xe7   :  { %v716_v43 = vpop.eup %715  ;;  %666 = vmatprep.subr.bf16.mxu1 %v800_v57 }
  0xe8   :  { %v718_v44 = vpop.eup %717  ;;  %v166_v45 = vxor.u32 2147483648, %v716_v43 }
  0xe9   :  { %v163_v46 = vxor.u32 2147483648, %v718_v44 }
  0xea   :  { %v167_v47 = vsel %vm165_vm9, %v166_v45, %v718_v44  ;;  %v271_v22 = vsel %vm269_vm10, %v166_v45, %v718_v44  ;;  %667 = vmatpush3.bf16.msra.mxu1 %v714_v63 }
  0xeb   :  { %v164_v48 = vsel %vm162_vm11, %v716_v43, %v163_v46  ;;  %v268_v49 = vsel %vm266_vm12, %v716_v43, %v163_v46 }
  0xec   :  { %v168_v50 = vsel %vm161_vm13, %v164_v48, %v167_v47  ;;  %v272_v51 = vsel %vm265_vm14, %v268_v49, %v271_v22 }
  0xed   :  { %v169_v52 = vsel %vm159_vm15, nan, %v168_v50  ;;  %v273_v53 = vsel %vm159_vm15, nan, %v272_v51 }
  0xee   :  { %v274_v54 = vpack.c.bf16 %v169_v52, %v169_v52  ;;  %v275_v55 = vpack.c.bf16 %v273_v53, %v273_v53 }
  0xf0   :  { %443 = vmatprep.mubr.bf16.mxu0 %v275_v55 }
  0xf1   :  { %444 = vmatmul.mubr.bf16.vlgmr.msra.gmra.mxu0 %v274_v54 }
 0x1b1   :  { %v637_v0 = vpop.f32.mrf.mxu0 }
 0x1b3   :  { %v638_v2 = vpop.f32.mrf.mxu0 }
 0x1b4   :  { %v639_v3 = vadd.f32 %v638_v2, %v637_v0 }
 0x1b5   :  { %v640_v4 = vpop.f32.mrf.mxu0 }
 0x1b6   :  { %v446_v5 = vadd.f32 %v639_v3, %v595_v1 }
 0x1b7   :  { %v641_v6 = vpop.f32.mrf.mxu0 }
 0x1b8   :  { %v451_v7 = vsub.f32 0.0, %v446_v5 }
 0x1ba   :  { %v452_v8 = vmul.f32 1.442695, %v451_v7 }
 0x1bc   :  { %719 = vpow2.f32 %v452_v8 }
 0x1c9   :  { %v720_v9 = vpop.eup %719 }
 0x1ca   :  { %v454_v10 = vadd.f32 1.0, %v720_v9 }
 0x1cc   :  { %721 = vrcp.f32 %v454_v10 }
 0x1d9   :  { %v722_v11 = vpop.eup %721 }
 0x1da   :  { %v456_v12 = vmul.f32 %v722_v11, %v446_v5 }
 0x1dc   :  { %v457_v13 = vpack.c.bf16 %v456_v12, %v456_v12 }
 0x1de   :  { %669 = vmatmul.mubr.bf16.vlgmr.msra.gmra.mxu1 %v457_v13 }
 0x29e   :  { %v563_v15 = vpop.f32.mrf.mxu1 }
 0x29f   :  { %v564_v16 = vadd.f32 %v612_v14, %v563_v15 }
 0x2a0   :  { %v670_v17 = vpop.f32.mrf.mxu1 }
 0x2a1   :  { %569 = vst [vmem:[#allocation7] sm:$0xff] %v564_v16 }
 0x2a2   :  { %v566_v18 = vpop.f32.mrf.mxu1 }
 0x2a3   :  { %774 = shalt.err (!%p771_p0)
}
 0x2a4   :  { %579 = dma.vmem_to_hbm [thread:$0]  %s577_s13, 128, %s886_s6, [#allocation4]   ;;  %v671_v19 = vpop.f32.mrf.mxu1 }
 0x2a5   :  { %787 = dma.done.wait [#allocation4], 128  }
 0x2a6   :  { %788 = vsyncadd [#allocation4], 4294967168 }
 0x2a7   :  { %583 = vsyncpa [#allocation3], 1 }
 0x2a8   :  { %584 = vsyncpa [#allocation6], 1 }
 0x2a9   :  { %585 = vsyncpa [#allocation4], 1 }

</bundles_post_ra>
